<compile_context>
chip_gen: v5e
topology: v5e:2x2
jax: 0.10.0
libtpu: 0.0.40
codegen_flags: <defaults>
</compile_context>

<pallas_src>
import functools

import jax
import jax.numpy as jnp
from jax import lax
from jax.experimental import pallas as pl
from jax.experimental.pallas import tpu as pltpu


def _sinkhorn_kernel(logits_t_ref, plan_t_ref, a_ref, b_ref, err_ref, *,
                     n, k, epsilon, gamma, rho, stoperr, num_chunks, unroll,
                     semi_use):
    """Semi-relaxed curriculum Sinkhorn on a padded, transposed (k1_p, n_p) tile.

    Axis 0 (sublanes) = classes 0..k (k real classes + 1 dummy), padded to k1_p.
    Axis 1 (lanes)    = samples 0..n-1, padded to n_p.
    """
    k1_p, n_p = logits_t_ref.shape
    f32 = jnp.float32

    # Small lane-/sublane-shaped index helpers (built once, outside the loop).
    cls_idx = lax.broadcasted_iota(jnp.int32, (k1_p, 1), 0)     # (k1_p, 1)
    smp_idx = lax.broadcasted_iota(jnp.int32, (1, n_p), 1)      # (1, n_p)
    real_cls = cls_idx <= k          # true transport rows (k classes + dummy)
    pow_cls = cls_idx < k            # semi-relaxed pow applies to b[:-1] only
    dummy_cls = cls_idx == k

    # ---- prologue: Q = exp(log_softmax/eps); Q is stored IN plan_t_ref -------
    x = logits_t_ref[...]                                        # pad rows = -1e30
    m = jnp.max(x, axis=0, keepdims=True)                        # (1, n_p)
    z = x - m
    lse = jnp.log(jnp.sum(jnp.exp(z), axis=0, keepdims=True))    # (1, n_p)
    inv_eps = f32(1.0 / epsilon)
    q = jnp.exp((z - lse) * inv_eps)        # padded class rows -> exactly 0
    q = jnp.where(dummy_cls, f32(1.0), q)   # dummy transport class (cost 0)
    plan_t_ref[...] = q                     # reuse the output block as Q storage

    # Marginals; padded rows / columns carry zero mass.
    Pa = jnp.where(smp_idx < n, f32(1.0 / n), f32(0.0))                    # (1, n_p)
    Pb = jnp.where(pow_cls, f32(rho / k),
                   jnp.where(dummy_cls, f32(1.0 - rho), f32(0.0)))         # (k1_p, 1)

    fi = f32(gamma / (gamma + epsilon))
    stoperr_sq = f32(stoperr * stoperr)
    tiny = f32(1e-30)

    def _recip(v):
        # EUP approximate reciprocal seed + one Newton step (~full f32 accuracy).
        r = pl.reciprocal(v, approx=True)
        return r * (f32(2.0) - v * r)

    # ---- state init -----------------------------------------------------------
    a_ref[...] = jnp.zeros_like(a_ref)
    b_ref[...] = jnp.where(real_cls, f32(1.0 / (k + 1)), f32(0.0))
    err_ref[0] = f32(1.0)            # torch: err = 1 (held here as err^2)

    # ---- chunk-unrolled Sinkhorn loop, gated on convergence -------------------
    def chunk(_, carry):
        @pl.when(err_ref[0] > stoperr_sq)
        def _steps():
            b = b_ref[...]                                                # (k1_p, 1)
            a = a_ref[...]                                                # (1, n_p)
            for u in range(unroll):
                # a = Pa / (Q @ b): lane-broadcast of b + cheap sublane reduce.
                qb = jnp.sum(plan_t_ref[...] * b, axis=0, keepdims=True)  # (1, n_p)
                a = Pa * _recip(jnp.maximum(qb, tiny))
                # b = Pb / (Q.T @ a): sublane-broadcast of a + small lane reduce.
                qta = jnp.sum(plan_t_ref[...] * a, axis=1, keepdims=True)  # (k1_p, 1)
                qta = jnp.where(real_cls, jnp.maximum(qta, tiny), f32(1.0))
                nb = Pb * _recip(qta)
                if semi_use:
                    # b[:-1] ** fi, guarded so log never sees 0 (no inf on EUP).
                    powed = jnp.exp(fi * jnp.log(jnp.maximum(nb, tiny)))
                    nb = jnp.where(pow_cls,
                                   jnp.where(nb > 0, powed, f32(0.0)), nb)
                if u == unroll - 1:
                    d = nb - b
                    err_ref[0] = jnp.sum(d * d)    # ||b_new - b||^2 (no sqrt)
                b = nb
            a_ref[...] = a
            b_ref[...] = b
        return carry

    lax.fori_loop(0, num_chunks, chunk, 0)

    # ---- epilogue: plan = n * a * Q * b (dummy & pad rows sliced on host) -----
    plan_t_ref[...] = (a_ref[...] * f32(n)) * plan_t_ref[...] * b_ref[...]


def _vmem_capacity_bytes():
    """Per-core VMEM capacity, with a conservative fallback."""
    try:
        cap = int(getattr(pltpu.get_tpu_info(), "vmem_capacity_bytes", 0))
        if cap > (16 << 20):
            return cap
    except Exception:
        pass
    return 64 << 20    # conservative default (v7x per-TC VMEM)


def semi_curr_sinkhorn_knopp(logits, *, epsilon=0.1, gamma=1.0, rho=0.0,
                             stoperr=1e-6, num_itermax=1000, semi_use=True,
                             unroll=4):
    """Forward pass of SemiCurrSinkhornKnopp (prior=None, fresh b each call)."""
    logits = lax.stop_gradient(logits).astype(jnp.float32)      # logits.detach()
    n, k = logits.shape

    # Transposed, padded layout: classes (k real + 1 dummy) on sublanes, samples
    # on lanes -> cross-lane reduce scales with (k+1)/8, not n/8.
    k1_p = max(8, ((k + 1 + 7) // 8) * 8)              # sublane multiple, >= 8
    n_p = max(128, ((n + 127) // 128) * 128)           # lane multiple, >= 128

    # Pad: extra sample columns get logit 0 (harmless: their marginal Pa is 0),
    # extra class rows get a huge negative logit (their Q == 0 exactly).
    xt = logits.T                                                      # (k, n)
    xt = jnp.pad(xt, ((0, 0), (0, n_p - n)), constant_values=0.0)
    xt = jnp.pad(xt, ((0, k1_p - k), (0, 0)), constant_values=-1e30)

    unroll = int(max(1, min(int(unroll), int(num_itermax))))
    num_chunks = -(-int(num_itermax) // unroll)     # ceil; <= unroll-1 extra iters

    kernel = functools.partial(
        _sinkhorn_kernel, n=n, k=k, epsilon=float(epsilon), gamma=float(gamma),
        rho=float(rho), stoperr=float(stoperr), num_chunks=num_chunks,
        unroll=unroll, semi_use=bool(semi_use))

    # VMEM budget from the actual live set: one in block + one out block
    # (Buffered(1) each), plus one block of slack for prologue temporaries and
    # small scratch, clamped to the chip's VMEM capacity minus headroom.
    block_bytes = k1_p * n_p * 4
    small_bytes = (k1_p + n_p + 128) * 4
    budget = _vmem_capacity_bytes() - (8 << 20)
    min_needed = 2 * block_bytes + small_bytes + (1 << 20)
    if min_needed > budget:
        # TODO(synk): row-streamed fallback (emit_pipeline) for oversize problems.
        raise ValueError(
            f"SemiCurrSinkhornKnopp: single-block kernel needs ~{min_needed >> 20} MiB "
            f"VMEM but only ~{budget >> 20} MiB is available "
            f"(n={n}, k={k}, padded tile {k1_p}x{n_p}).")
    vmem_limit = int(min(budget,
                         max(16 << 20, 3 * block_bytes + small_bytes + (4 << 20))))

    plan_t = pl.pallas_call(
        kernel,
        out_shape=jax.ShapeDtypeStruct((k1_p, n_p), jnp.float32),
        grid_spec=pltpu.PrefetchScalarGridSpec(
            num_scalar_prefetch=0,
            grid=(1,),
            in_specs=[pl.BlockSpec((k1_p, n_p), lambda i: (0, 0),
                                   pipeline_mode=pl.Buffered(1))],
            out_specs=pl.BlockSpec((k1_p, n_p), lambda i: (0, 0),
                                   pipeline_mode=pl.Buffered(1)),
            scratch_shapes=[
                pltpu.VMEM((1, n_p), jnp.float32),    # a (sample scaling)
                pltpu.VMEM((k1_p, 1), jnp.float32),   # b (class scaling + dummy)
                pltpu.SMEM((1,), jnp.float32),        # ||b_new - b||^2
            ]),
        # xt is a wrapper-local temporary, so donating its HBM buffer is safe.
        input_output_aliases={0: 0},
        compiler_params=pltpu.CompilerParams(
            dimension_semantics=("arbitrary",),
            vmem_limit_bytes=vmem_limit),
    )(xt)

    # Drop dummy class row + padding, transpose back to (n, k).
    return plan_t[:k, :n].T


def _reference(logits, *, epsilon, gamma, rho, stoperr, num_itermax, semi_use):
    """Pure-JAX float32 mirror of the PyTorch cost_forward (for validation)."""
    n, k = logits.shape
    cost = -jax.nn.log_softmax(logits.astype(jnp.float32), axis=1)
    expand = jnp.concatenate([cost, jnp.zeros((n, 1), cost.dtype)], axis=1)
    Q = jnp.exp(-expand / epsilon)
    Pa = jnp.ones((n, 1), jnp.float32) / n
    Pb = jnp.full((k + 1, 1), rho / k, jnp.float32).at[-1].set(1.0 - rho)
    b = jnp.ones((k + 1, 1), jnp.float32) / (k + 1)
    fi = gamma / (gamma + epsilon)

    def body(_, carry):
        a, b, err, itn = carry
        cont = jnp.logical_and(err > stoperr, itn < num_itermax)
        a_new = Pa / (Q @ b)
        b_new = Pb / (Q.T @ a_new)
        if semi_use:
            b_new = b_new.at[:-1, :].set(b_new[:-1, :] ** fi)
        new_err = jnp.linalg.norm(b_new - b)
        return (jnp.where(cont, a_new, a), jnp.where(cont, b_new, b),
                jnp.where(cont, new_err, err),
                jnp.where(cont, itn + jnp.int32(1), itn))

    init = (jnp.zeros((n, 1), jnp.float32), b, jnp.float32(1.0), jnp.int32(0))
    a, b, _, _ = lax.fori_loop(0, num_itermax, body, init)
    plan = a * Q * b.T * n
    return plan[:, :-1].astype(jnp.float32)


if __name__ == "__main__":
    key = jax.random.PRNGKey(0)

    # (n, k, rho): exercises sublane/lane padding, rho=0 and rho>0 paths, a
    # multi-vreg lane axis (n=300), and the (unusual) k > n orientation.
    cases = [(8, 4, 0.5), (13, 6, 0.3), (8, 4, 0.0), (300, 10, 0.2), (8, 20, 0.4)]
    for idx, (n, k, rho) in enumerate(cases):
        sub = jax.random.fold_in(key, idx)
        logits = jax.random.normal(sub, (n, k), dtype=jnp.float32)
        kwargs = dict(epsilon=0.1, gamma=1.0, rho=rho, stoperr=1e-6,
                      num_itermax=1000, semi_use=True)

        plan = semi_curr_sinkhorn_knopp(logits, **kwargs)
        jax.block_until_ready(plan)

        ref = _reference(logits, **kwargs)
        assert plan.shape == (n, k) and plan.dtype == jnp.float32
        assert bool(jnp.all(jnp.isfinite(plan))), ("non-finite plan", n, k, rho)
        assert bool(jnp.allclose(plan, ref, rtol=1e-3, atol=1e-3)), (
            "mismatch", n, k, rho,
            float(jnp.max(jnp.abs(plan - ref))))

    print("KERNEL_OK")
</pallas_src>

<mosaic_0001>
module attributes {stable_mosaic.version = 11 : i64} {
  func.func @_sinkhorn_kernel(%arg0: i32, %arg1: memref<8x128xf32, #tpu.memory_space<vmem>>, %arg2: memref<8x128xf32, #tpu.memory_space<vmem>>, %arg3: memref<1x128xf32, #tpu.memory_space<vmem>>, %arg4: memref<8x1xf32, #tpu.memory_space<vmem>>, %arg5: memref<1xf32, #tpu.memory_space<smem>>) attributes {dimension_semantics = [#tpu.dimension_semantics<arbitrary>], iteration_bounds = array<i64: 1>, scalar_prefetch = 0 : i64, scratch_operands = 3 : i64, tpu.core_type = #tpu.core_type<tc>, window_params = [{pipeline_mode = #tpu.pipeline_mode<synchronous>, transform_indices = @transform_0, window_bounds = array<i64: 8, 128>}, {pipeline_mode = #tpu.pipeline_mode<synchronous>, transform_indices = @transform_1, window_bounds = array<i64: 8, 128>}]} {
    %0 = tpu.iota {dimensions = array<i32: 0>} : vector<8x1xi32>
    %1 = tpu.iota {dimensions = array<i32: 1>} : vector<1x128xi32>
    %c4_i32 = arith.constant 4 : i32
    %2 = vector.broadcast %c4_i32 : i32 to vector<8x1xi32>
    %3 = arith.cmpi sle, %0, %2 : vector<8x1xi32>
    %c4_i32_0 = arith.constant 4 : i32
    %4 = vector.broadcast %c4_i32_0 : i32 to vector<8x1xi32>
    %5 = arith.cmpi slt, %0, %4 : vector<8x1xi32>
    %c4_i32_1 = arith.constant 4 : i32
    %6 = vector.broadcast %c4_i32_1 : i32 to vector<8x1xi32>
    %7 = arith.cmpi eq, %0, %6 : vector<8x1xi32>
    %c0 = arith.constant 0 : index
    %c0_2 = arith.constant 0 : index
    %8 = vector.load %arg1[%c0, %c0_2] : memref<8x128xf32, #tpu.memory_space<vmem>>, vector<8x128xf32>
    %cst = arith.constant dense<0xFF800000> : vector<128xf32>
    %9 = vector.multi_reduction <maximumf>, %8, %cst [0] : vector<8x128xf32> to vector<128xf32>
    %10 = vector.shape_cast %9 : vector<128xf32> to vector<1x128xf32>
    %11 = vector.broadcast %10 : vector<1x128xf32> to vector<8x128xf32>
    %12 = arith.subf %8, %11 : vector<8x128xf32>
    %13 = math.exp %12 : vector<8x128xf32>
    %cst_3 = arith.constant dense<0.000000e+00> : vector<128xf32>
    %14 = vector.multi_reduction <add>, %13, %cst_3 [0] : vector<8x128xf32> to vector<128xf32>
    %15 = vector.shape_cast %14 : vector<128xf32> to vector<1x128xf32>
    %16 = math.log %15 : vector<1x128xf32>
    %17 = vector.broadcast %16 : vector<1x128xf32> to vector<8x128xf32>
    %18 = arith.subf %12, %17 : vector<8x128xf32>
    %cst_4 = arith.constant 1.000000e+01 : f32
    %19 = vector.broadcast %cst_4 : f32 to vector<8x128xf32>
    %20 = arith.mulf %18, %19 : vector<8x128xf32>
    %21 = math.exp %20 : vector<8x128xf32>
    %cst_5 = arith.constant 1.000000e+00 : f32
    %22 = vector.shape_cast %7 : vector<8x1xi1> to vector<8x1xi1>
    %23 = vector.broadcast %22 : vector<8x1xi1> to vector<8x128xi1>
    %24 = vector.broadcast %cst_5 : f32 to vector<8x128xf32>
    %25 = arith.select %23, %24, %21 : vector<8x128xi1>, vector<8x128xf32>
    %c0_6 = arith.constant 0 : index
    %c0_7 = arith.constant 0 : index
    %26 = vector.load %arg2[%c0_6, %c0_7] : memref<8x128xf32, #tpu.memory_space<vmem>>, vector<8x128xf32>
    tpu.vector_store %arg2[%c0_6, %c0_7], %25 {strides = array<i32>} : memref<8x128xf32, #tpu.memory_space<vmem>>, vector<8x128xf32>,
    %c8_i32 = arith.constant 8 : i32
    %27 = vector.broadcast %c8_i32 : i32 to vector<1x128xi32>
    %28 = arith.cmpi slt, %1, %27 : vector<1x128xi32>
    %cst_8 = arith.constant 1.250000e-01 : f32
    %cst_9 = arith.constant 0.000000e+00 : f32
    %29 = vector.broadcast %cst_8 : f32 to vector<1x128xf32>
    %30 = vector.broadcast %cst_9 : f32 to vector<1x128xf32>
    %31 = arith.select %28, %29, %30 : vector<1x128xi1>, vector<1x128xf32>
    %cst_10 = arith.constant 5.000000e-01 : f32
    %cst_11 = arith.constant 0.000000e+00 : f32
    %32 = vector.broadcast %cst_10 : f32 to vector<8x1xf32>
    %33 = vector.broadcast %cst_11 : f32 to vector<8x1xf32>
    %34 = arith.select %7, %32, %33 : vector<8x1xi1>, vector<8x1xf32>
    %cst_12 = arith.constant 1.250000e-01 : f32
    %35 = vector.broadcast %cst_12 : f32 to vector<8x1xf32>
    %36 = arith.select %5, %35, %34 : vector<8x1xi1>, vector<8x1xf32>
    %cst_13 = arith.constant 0.000000e+00 : f32
    %37 = vector.broadcast %cst_13 : f32 to vector<1x128xf32>
    %c0_14 = arith.constant 0 : index
    %c0_15 = arith.constant 0 : index
    %38 = vector.load %arg3[%c0_14, %c0_15] : memref<1x128xf32, #tpu.memory_space<vmem>>, vector<1x128xf32>
    tpu.vector_store %arg3[%c0_14, %c0_15], %37 {strides = array<i32>} : memref<1x128xf32, #tpu.memory_space<vmem>>, vector<1x128xf32>,
    %cst_16 = arith.constant 2.000000e-01 : f32
    %cst_17 = arith.constant 0.000000e+00 : f32
    %39 = vector.broadcast %cst_16 : f32 to vector<8x1xf32>
    %40 = vector.broadcast %cst_17 : f32 to vector<8x1xf32>
    %41 = arith.select %3, %39, %40 : vector<8x1xi1>, vector<8x1xf32>
    %c0_18 = arith.constant 0 : index
    %c0_19 = arith.constant 0 : index
    %42 = vector.load %arg4[%c0_18, %c0_19] : memref<8x1xf32, #tpu.memory_space<vmem>>, vector<8x1xf32>
    tpu.vector_store %arg4[%c0_18, %c0_19], %41 {strides = array<i32>} : memref<8x1xf32, #tpu.memory_space<vmem>>, vector<8x1xf32>,
    %cst_20 = arith.constant 1.000000e+00 : f32
    %c0_21 = arith.constant 0 : index
    %43 = memref.load %arg5[%c0_21] : memref<1xf32, #tpu.memory_space<smem>>
    memref.store %cst_20, %arg5[%c0_21] : memref<1xf32, #tpu.memory_space<smem>>
    %cst_22 = arith.constant 9.99999996E-13 : f32
    %cst_23 = arith.constant 1.000000e-30 : f32
    %cst_24 = arith.constant 0.909090936 : f32
    %c0_i32 = arith.constant 0 : i32
    %c250_i32 = arith.constant 250 : i32
    %44 = arith.addi %c0_i32, %c250_i32 : i32
    %c1_i32 = arith.constant 1 : i32
    scf.for %arg6 = %c0_i32 to %44 step %c1_i32  : i32 {
      %c0_34 = arith.constant 0 : index
      %55 = memref.load %arg5[%c0_34] : memref<1xf32, #tpu.memory_space<smem>>
      %56 = arith.cmpf ogt, %55, %cst_22 : f32
      %57 = arith.extui %56 : i1 to i32
      %c0_i32_35 = arith.constant 0 : i32
      %58 = arith.cmpi ne, %57, %c0_i32_35 : i32
      scf.if %58 {
        %c0_36 = arith.constant 0 : index
        %c0_37 = arith.constant 0 : index
        %59 = vector.load %arg4[%c0_36, %c0_37] : memref<8x1xf32, #tpu.memory_space<vmem>>, vector<8x1xf32>
        %c0_38 = arith.constant 0 : index
        %c0_39 = arith.constant 0 : index
        %60 = vector.load %arg2[%c0_38, %c0_39] : memref<8x128xf32, #tpu.memory_space<vmem>>, vector<8x128xf32>
        %61 = vector.broadcast %59 : vector<8x1xf32> to vector<8x128xf32>
        %62 = arith.mulf %60, %61 : vector<8x128xf32>
        %cst_40 = arith.constant dense<0.000000e+00> : vector<128xf32>
        %63 = vector.multi_reduction <add>, %62, %cst_40 [0] : vector<8x128xf32> to vector<128xf32>
        %64 = vector.shape_cast %63 : vector<128xf32> to vector<1x128xf32>
        %65 = vector.broadcast %cst_23 : f32 to vector<1x128xf32>
        %66 = arith.maximumf %64, %65 : vector<1x128xf32>
        %67 = tpu.reciprocal %66 {approx = true} : vector<1x128xf32> -> vector<1x128xf32>
        %68 = arith.mulf %66, %67 : vector<1x128xf32>
        %cst_41 = arith.constant 2.000000e+00 : f32
        %69 = vector.broadcast %cst_41 : f32 to vector<1x128xf32>
        %70 = arith.subf %69, %68 : vector<1x128xf32>
        %71 = arith.mulf %67, %70 : vector<1x128xf32>
        %72 = arith.mulf %31, %71 : vector<1x128xf32>
        %c0_42 = arith.constant 0 : index
        %c0_43 = arith.constant 0 : index
        %73 = vector.load %arg2[%c0_42, %c0_43] : memref<8x128xf32, #tpu.memory_space<vmem>>, vector<8x128xf32>
        %74 = vector.broadcast %72 : vector<1x128xf32> to vector<8x128xf32>
        %75 = arith.mulf %73, %74 : vector<8x128xf32>
        %cst_44 = arith.constant dense<0.000000e+00> : vector<8xf32>
        %76 = vector.multi_reduction <add>, %75, %cst_44 [1] : vector<8x128xf32> to vector<8xf32>
        %77 = vector.shape_cast %76 : vector<8xf32> to vector<8x1xf32>
        %78 = vector.broadcast %cst_23 : f32 to vector<8x1xf32>
        %79 = arith.maximumf %77, %78 : vector<8x1xf32>
        %cst_45 = arith.constant 1.000000e+00 : f32
        %80 = vector.broadcast %cst_45 : f32 to vector<8x1xf32>
        %81 = arith.select %3, %79, %80 : vector<8x1xi1>, vector<8x1xf32>
        %82 = tpu.reciprocal %81 {approx = true} : vector<8x1xf32> -> vector<8x1xf32>
        %83 = arith.mulf %81, %82 : vector<8x1xf32>
        %cst_46 = arith.constant 2.000000e+00 : f32
        %84 = vector.broadcast %cst_46 : f32 to vector<8x1xf32>
        %85 = arith.subf %84, %83 : vector<8x1xf32>
        %86 = arith.mulf %82, %85 : vector<8x1xf32>
        %87 = arith.mulf %36, %86 : vector<8x1xf32>
        %88 = vector.broadcast %cst_23 : f32 to vector<8x1xf32>
        %89 = arith.maximumf %87, %88 : vector<8x1xf32>
        %90 = math.log %89 : vector<8x1xf32>
        %91 = vector.broadcast %cst_24 : f32 to vector<8x1xf32>
        %92 = arith.mulf %91, %90 : vector<8x1xf32>
        %93 = math.exp %92 : vector<8x1xf32>
        %cst_47 = arith.constant 0.000000e+00 : f32
        %94 = vector.broadcast %cst_47 : f32 to vector<8x1xf32>
        %95 = arith.cmpf ogt, %87, %94 : vector<8x1xf32>
        %cst_48 = arith.constant 0.000000e+00 : f32
        %96 = vector.broadcast %cst_48 : f32 to vector<8x1xf32>
        %97 = arith.select %95, %93, %96 : vector<8x1xi1>, vector<8x1xf32>
        %98 = arith.select %5, %97, %87 : vector<8x1xi1>, vector<8x1xf32>
        %c0_49 = arith.constant 0 : index
        %c0_50 = arith.constant 0 : index
        %99 = vector.load %arg2[%c0_49, %c0_50] : memref<8x128xf32, #tpu.memory_space<vmem>>, vector<8x128xf32>
        %100 = vector.broadcast %98 : vector<8x1xf32> to vector<8x128xf32>
        %101 = arith.mulf %99, %100 : vector<8x128xf32>
        %cst_51 = arith.constant dense<0.000000e+00> : vector<128xf32>
        %102 = vector.multi_reduction <add>, %101, %cst_51 [0] : vector<8x128xf32> to vector<128xf32>
        %103 = vector.shape_cast %102 : vector<128xf32> to vector<1x128xf32>
        %104 = vector.broadcast %cst_23 : f32 to vector<1x128xf32>
        %105 = arith.maximumf %103, %104 : vector<1x128xf32>
        %106 = tpu.reciprocal %105 {approx = true} : vector<1x128xf32> -> vector<1x128xf32>
        %107 = arith.mulf %105, %106 : vector<1x128xf32>
        %cst_52 = arith.constant 2.000000e+00 : f32
        %108 = vector.broadcast %cst_52 : f32 to vector<1x128xf32>
        %109 = arith.subf %108, %107 : vector<1x128xf32>
        %110 = arith.mulf %106, %109 : vector<1x128xf32>
        %111 = arith.mulf %31, %110 : vector<1x128xf32>
        %c0_53 = arith.constant 0 : index
        %c0_54 = arith.constant 0 : index
        %112 = vector.load %arg2[%c0_53, %c0_54] : memref<8x128xf32, #tpu.memory_space<vmem>>, vector<8x128xf32>
        %113 = vector.broadcast %111 : vector<1x128xf32> to vector<8x128xf32>
        %114 = arith.mulf %112, %113 : vector<8x128xf32>
        %cst_55 = arith.constant dense<0.000000e+00> : vector<8xf32>
        %115 = vector.multi_reduction <add>, %114, %cst_55 [1] : vector<8x128xf32> to vector<8xf32>
        %116 = vector.shape_cast %115 : vector<8xf32> to vector<8x1xf32>
        %117 = vector.broadcast %cst_23 : f32 to vector<8x1xf32>
        %118 = arith.maximumf %116, %117 : vector<8x1xf32>
        %cst_56 = arith.constant 1.000000e+00 : f32
        %119 = vector.broadcast %cst_56 : f32 to vector<8x1xf32>
        %120 = arith.select %3, %118, %119 : vector<8x1xi1>, vector<8x1xf32>
        %121 = tpu.reciprocal %120 {approx = true} : vector<8x1xf32> -> vector<8x1xf32>
        %122 = arith.mulf %120, %121 : vector<8x1xf32>
        %cst_57 = arith.constant 2.000000e+00 : f32
        %123 = vector.broadcast %cst_57 : f32 to vector<8x1xf32>
        %124 = arith.subf %123, %122 : vector<8x1xf32>
        %125 = arith.mulf %121, %124 : vector<8x1xf32>
        %126 = arith.mulf %36, %125 : vector<8x1xf32>
        %127 = vector.broadcast %cst_23 : f32 to vector<8x1xf32>
        %128 = arith.maximumf %126, %127 : vector<8x1xf32>
        %129 = math.log %128 : vector<8x1xf32>
        %130 = vector.broadcast %cst_24 : f32 to vector<8x1xf32>
        %131 = arith.mulf %130, %129 : vector<8x1xf32>
        %132 = math.exp %131 : vector<8x1xf32>
        %cst_58 = arith.constant 0.000000e+00 : f32
        %133 = vector.broadcast %cst_58 : f32 to vector<8x1xf32>
        %134 = arith.cmpf ogt, %126, %133 : vector<8x1xf32>
        %cst_59 = arith.constant 0.000000e+00 : f32
        %135 = vector.broadcast %cst_59 : f32 to vector<8x1xf32>
        %136 = arith.select %134, %132, %135 : vector<8x1xi1>, vector<8x1xf32>
        %137 = arith.select %5, %136, %126 : vector<8x1xi1>, vector<8x1xf32>
        %c0_60 = arith.constant 0 : index
        %c0_61 = arith.constant 0 : index
        %138 = vector.load %arg2[%c0_60, %c0_61] : memref<8x128xf32, #tpu.memory_space<vmem>>, vector<8x128xf32>
        %139 = vector.broadcast %137 : vector<8x1xf32> to vector<8x128xf32>
        %140 = arith.mulf %138, %139 : vector<8x128xf32>
        %cst_62 = arith.constant dense<0.000000e+00> : vector<128xf32>
        %141 = vector.multi_reduction <add>, %140, %cst_62 [0] : vector<8x128xf32> to vector<128xf32>
        %142 = vector.shape_cast %141 : vector<128xf32> to vector<1x128xf32>
        %143 = vector.broadcast %cst_23 : f32 to vector<1x128xf32>
        %144 = arith.maximumf %142, %143 : vector<1x128xf32>
        %145 = tpu.reciprocal %144 {approx = true} : vector<1x128xf32> -> vector<1x128xf32>
        %146 = arith.mulf %144, %145 : vector<1x128xf32>
        %cst_63 = arith.constant 2.000000e+00 : f32
        %147 = vector.broadcast %cst_63 : f32 to vector<1x128xf32>
        %148 = arith.subf %147, %146 : vector<1x128xf32>
        %149 = arith.mulf %145, %148 : vector<1x128xf32>
        %150 = arith.mulf %31, %149 : vector<1x128xf32>
        %c0_64 = arith.constant 0 : index
        %c0_65 = arith.constant 0 : index
        %151 = vector.load %arg2[%c0_64, %c0_65] : memref<8x128xf32, #tpu.memory_space<vmem>>, vector<8x128xf32>
        %152 = vector.broadcast %150 : vector<1x128xf32> to vector<8x128xf32>
        %153 = arith.mulf %151, %152 : vector<8x128xf32>
        %cst_66 = arith.constant dense<0.000000e+00> : vector<8xf32>
        %154 = vector.multi_reduction <add>, %153, %cst_66 [1] : vector<8x128xf32> to vector<8xf32>
        %155 = vector.shape_cast %154 : vector<8xf32> to vector<8x1xf32>
        %156 = vector.broadcast %cst_23 : f32 to vector<8x1xf32>
        %157 = arith.maximumf %155, %156 : vector<8x1xf32>
        %cst_67 = arith.constant 1.000000e+00 : f32
        %158 = vector.broadcast %cst_67 : f32 to vector<8x1xf32>
        %159 = arith.select %3, %157, %158 : vector<8x1xi1>, vector<8x1xf32>
        %160 = tpu.reciprocal %159 {approx = true} : vector<8x1xf32> -> vector<8x1xf32>
        %161 = arith.mulf %159, %160 : vector<8x1xf32>
        %cst_68 = arith.constant 2.000000e+00 : f32
        %162 = vector.broadcast %cst_68 : f32 to vector<8x1xf32>
        %163 = arith.subf %162, %161 : vector<8x1xf32>
        %164 = arith.mulf %160, %163 : vector<8x1xf32>
        %165 = arith.mulf %36, %164 : vector<8x1xf32>
        %166 = vector.broadcast %cst_23 : f32 to vector<8x1xf32>
        %167 = arith.maximumf %165, %166 : vector<8x1xf32>
        %168 = math.log %167 : vector<8x1xf32>
        %169 = vector.broadcast %cst_24 : f32 to vector<8x1xf32>
        %170 = arith.mulf %169, %168 : vector<8x1xf32>
        %171 = math.exp %170 : vector<8x1xf32>
        %cst_69 = arith.constant 0.000000e+00 : f32
        %172 = vector.broadcast %cst_69 : f32 to vector<8x1xf32>
        %173 = arith.cmpf ogt, %165, %172 : vector<8x1xf32>
        %cst_70 = arith.constant 0.000000e+00 : f32
        %174 = vector.broadcast %cst_70 : f32 to vector<8x1xf32>
        %175 = arith.select %173, %171, %174 : vector<8x1xi1>, vector<8x1xf32>
        %176 = arith.select %5, %175, %165 : vector<8x1xi1>, vector<8x1xf32>
        %c0_71 = arith.constant 0 : index
        %c0_72 = arith.constant 0 : index
        %177 = vector.load %arg2[%c0_71, %c0_72] : memref<8x128xf32, #tpu.memory_space<vmem>>, vector<8x128xf32>
        %178 = vector.broadcast %176 : vector<8x1xf32> to vector<8x128xf32>
        %179 = arith.mulf %177, %178 : vector<8x128xf32>
        %cst_73 = arith.constant dense<0.000000e+00> : vector<128xf32>
        %180 = vector.multi_reduction <add>, %179, %cst_73 [0] : vector<8x128xf32> to vector<128xf32>
        %181 = vector.shape_cast %180 : vector<128xf32> to vector<1x128xf32>
        %182 = vector.broadcast %cst_23 : f32 to vector<1x128xf32>
        %183 = arith.maximumf %181, %182 : vector<1x128xf32>
        %184 = tpu.reciprocal %183 {approx = true} : vector<1x128xf32> -> vector<1x128xf32>
        %185 = arith.mulf %183, %184 : vector<1x128xf32>
        %cst_74 = arith.constant 2.000000e+00 : f32
        %186 = vector.broadcast %cst_74 : f32 to vector<1x128xf32>
        %187 = arith.subf %186, %185 : vector<1x128xf32>
        %188 = arith.mulf %184, %187 : vector<1x128xf32>
        %189 = arith.mulf %31, %188 : vector<1x128xf32>
        %c0_75 = arith.constant 0 : index
        %c0_76 = arith.constant 0 : index
        %190 = vector.load %arg2[%c0_75, %c0_76] : memref<8x128xf32, #tpu.memory_space<vmem>>, vector<8x128xf32>
        %191 = vector.broadcast %189 : vector<1x128xf32> to vector<8x128xf32>
        %192 = arith.mulf %190, %191 : vector<8x128xf32>
        %cst_77 = arith.constant dense<0.000000e+00> : vector<8xf32>
        %193 = vector.multi_reduction <add>, %192, %cst_77 [1] : vector<8x128xf32> to vector<8xf32>
        %194 = vector.shape_cast %193 : vector<8xf32> to vector<8x1xf32>
        %195 = vector.broadcast %cst_23 : f32 to vector<8x1xf32>
        %196 = arith.maximumf %194, %195 : vector<8x1xf32>
        %cst_78 = arith.constant 1.000000e+00 : f32
        %197 = vector.broadcast %cst_78 : f32 to vector<8x1xf32>
        %198 = arith.select %3, %196, %197 : vector<8x1xi1>, vector<8x1xf32>
        %199 = tpu.reciprocal %198 {approx = true} : vector<8x1xf32> -> vector<8x1xf32>
        %200 = arith.mulf %198, %199 : vector<8x1xf32>
        %cst_79 = arith.constant 2.000000e+00 : f32
        %201 = vector.broadcast %cst_79 : f32 to vector<8x1xf32>
        %202 = arith.subf %201, %200 : vector<8x1xf32>
        %203 = arith.mulf %199, %202 : vector<8x1xf32>
        %204 = arith.mulf %36, %203 : vector<8x1xf32>
        %205 = vector.broadcast %cst_23 : f32 to vector<8x1xf32>
        %206 = arith.maximumf %204, %205 : vector<8x1xf32>
        %207 = math.log %206 : vector<8x1xf32>
        %208 = vector.broadcast %cst_24 : f32 to vector<8x1xf32>
        %209 = arith.mulf %208, %207 : vector<8x1xf32>
        %210 = math.exp %209 : vector<8x1xf32>
        %cst_80 = arith.constant 0.000000e+00 : f32
        %211 = vector.broadcast %cst_80 : f32 to vector<8x1xf32>
        %212 = arith.cmpf ogt, %204, %211 : vector<8x1xf32>
        %cst_81 = arith.constant 0.000000e+00 : f32
        %213 = vector.broadcast %cst_81 : f32 to vector<8x1xf32>
        %214 = arith.select %212, %210, %213 : vector<8x1xi1>, vector<8x1xf32>
        %215 = arith.select %5, %214, %204 : vector<8x1xi1>, vector<8x1xf32>
        %216 = arith.subf %215, %176 : vector<8x1xf32>
        %217 = arith.mulf %216, %216 : vector<8x1xf32>
        %218 = vector.shape_cast %217 : vector<8x1xf32> to vector<1x8x1xf32>
        %cst_82 = arith.constant dense<0.000000e+00> : vector<1xf32>
        %219 = vector.multi_reduction <add>, %218, %cst_82 [1, 2] : vector<1x8x1xf32> to vector<1xf32>
        %220 = vector.shape_cast %219 : vector<1xf32> to vector<1x1x1xf32>
        %221 = vector.extract %220[0, 0, 0] : f32 from vector<1x1x1xf32>
        %c0_83 = arith.constant 0 : index
        %222 = memref.load %arg5[%c0_83] : memref<1xf32, #tpu.memory_space<smem>>
        memref.store %221, %arg5[%c0_83] : memref<1xf32, #tpu.memory_space<smem>>
        %c0_84 = arith.constant 0 : index
        %c0_85 = arith.constant 0 : index
        %223 = vector.load %arg3[%c0_84, %c0_85] : memref<1x128xf32, #tpu.memory_space<vmem>>, vector<1x128xf32>
        tpu.vector_store %arg3[%c0_84, %c0_85], %189 {strides = array<i32>} : memref<1x128xf32, #tpu.memory_space<vmem>>, vector<1x128xf32>,
        %c0_86 = arith.constant 0 : index
        %c0_87 = arith.constant 0 : index
        %224 = vector.load %arg4[%c0_86, %c0_87] : memref<8x1xf32, #tpu.memory_space<vmem>>, vector<8x1xf32>
        tpu.vector_store %arg4[%c0_86, %c0_87], %215 {strides = array<i32>} : memref<8x1xf32, #tpu.memory_space<vmem>>, vector<8x1xf32>,
      } else {
      }
    }
    %c0_25 = arith.constant 0 : index
    %c0_26 = arith.constant 0 : index
    %45 = vector.load %arg3[%c0_25, %c0_26] : memref<1x128xf32, #tpu.memory_space<vmem>>, vector<1x128xf32>
    %cst_27 = arith.constant 8.000000e+00 : f32
    %46 = vector.broadcast %cst_27 : f32 to vector<1x128xf32>
    %47 = arith.mulf %45, %46 : vector<1x128xf32>
    %c0_28 = arith.constant 0 : index
    %c0_29 = arith.constant 0 : index
    %48 = vector.load %arg2[%c0_28, %c0_29] : memref<8x128xf32, #tpu.memory_space<vmem>>, vector<8x128xf32>
    %49 = vector.broadcast %47 : vector<1x128xf32> to vector<8x128xf32>
    %50 = arith.mulf %49, %48 : vector<8x128xf32>
    %c0_30 = arith.constant 0 : index
    %c0_31 = arith.constant 0 : index
    %51 = vector.load %arg4[%c0_30, %c0_31] : memref<8x1xf32, #tpu.memory_space<vmem>>, vector<8x1xf32>
    %52 = vector.broadcast %51 : vector<8x1xf32> to vector<8x128xf32>
    %53 = arith.mulf %50, %52 : vector<8x128xf32>
    %c0_32 = arith.constant 0 : index
    %c0_33 = arith.constant 0 : index
    %54 = vector.load %arg2[%c0_32, %c0_33] : memref<8x128xf32, #tpu.memory_space<vmem>>, vector<8x128xf32>
    tpu.vector_store %arg2[%c0_32, %c0_33], %53 {strides = array<i32>} : memref<8x128xf32, #tpu.memory_space<vmem>>, vector<8x128xf32>,
    return
  }
  func.func @transform_0(%arg0: i32) -> (i32, i32) {
    %c0_i32 = arith.constant 0 : i32
    %c0_i32_0 = arith.constant 0 : i32
    %c0_i32_1 = arith.constant 0 : i32
    return %c0_i32, %c0_i32_0 : i32, i32
  }
  func.func @transform_1(%arg0: i32) -> (i32, i32) {
    %c0_i32 = arith.constant 0 : i32
    %c0_i32_0 = arith.constant 0 : i32
    %c0_i32_1 = arith.constant 0 : i32
    return %c0_i32, %c0_i32_0 : i32, i32
  }
}

</mosaic_0001>

<bundles_post_ra>
// kernel: tpu_custom_call.1
= control target key start
LH: loop header
LB: loop body
LE: loop exit
PB: predicated region body
PF: predicated region fallthrough
CT: control target
= control target key end

     0   :  { %6 = vsyncpa [#allocation6], 0  ;;  %s464_s0 = inlined_call_operand.hbm [shape: f32[8,128], index: 0, kind: input, shape index: {}, may-alias: {0,1}]   ;;  %s465_s1 = inlined_call_operand.hbm [shape: f32[8,128], index: 1, kind: output, shape index: {}, may-alias: {0,1}]  }
   0x1   :  { %7 = vsyncpa [#allocation7], 0  ;;  %s13_s8 = sshll.u32 %s464_s0, 4  ;;  %s380_s9 = smov [#allocation5]   ;;  %s14_s8 = int_to_ptr.hbm [resolvable:$true] %s13_s8 }
   0x2   :  { %s15_s10 = sshll.u32 %s380_s9, 4  ;;  %s16_s10 = int_to_ptr.vmem [resolvable:$true] %s15_s10 }
   0x3   :  { %18 = dma.hbm_to_vmem [thread:$0]  %s14_s8, 128, %s16_s10, [#allocation6]  }
   0x4   :  { %372 = dma.done.wait [#allocation6], 128  }
   0x5   :  { %373 = vsyncadd [#allocation6], 4294967168  ;;  %s381_s11 = smov 1.0   ;;  %v30_v0 = vld [vmem:[#allocation5] sm:$0xff]  ;;  %v23_v8 = vlaneseq  ;;  %v382_v15 = vmov 0.0   ;;  %vm62_vm4 = vcmask 7168  }
   0x6   :  { %65 = sst [smem:[#allocation4]] %s381_s11  ;;  %v31_v1 = vrot.slane %v30_v0, 4  ;;  %60 = vst [vmem:[#allocation2] sm:$0x1] %v382_v15  ;;  %s417_s0 = smov 0  }
   0x7   :  { %v399_v10 = vshrl.u32 %v23_v8, 7  ;;  %v26_v11 = vand.u32 127, %v23_v8 }
   0x8   :  { %v32_v2 = vmax.f32 %v30_v0, %v31_v1 }
   0x9   :  { %vm29_vm0 = vcmp.eq.s32.totalorder %v399_v10, 4  ;;  %vm28_vm1 = vcmp.lt.s32.totalorder %v399_v10, 4  ;;  %vm27_vm2 = vcmp.le.s32.totalorder %v399_v10, 4  ;;  %vm56_vm3 = vcmp.lt.s32.totalorder %v26_v11, 8 }
   0xa   :  { %v33_v3 = vrot.slane %v32_v2, 2  ;;  %v58_v16 = vsel %vm29_vm0, 0.5, %v382_v15  ;;  %v61_v17 = vsel %vm27_vm2, 0.2, %v382_v15  ;;  %v408_v18 = vsel %vm56_vm3, 0.125, %v382_v15 }
   0xb   :  { %v412_v19 = vsel %vm28_vm1, 0.125, %v58_v16  ;;  %63 = vst.msk [vmem:[#allocation3] sm:$0xff] %vm62_vm4, %v61_v17 }
   0xc   :  { %v34_v4 = vmax.f32 %v32_v2, %v33_v3 }
   0xe   :  { %v35_v5 = vrot.slane %v34_v4, 1 }
  0x10   :  { %v36_v6 = vmax.f32 %v34_v4, %v35_v5 }
  0x12   :  { %v37_v7 = vsub.f32 %v30_v0, %v36_v6 }
  0x14   :  { %v38_v9 = vmul.f32 1.442695, %v37_v7 }
  0x16   :  { %280 = vpow2.f32 %v38_v9 }
  0x1c   :  { %v281_v12 = vpop.eup %280 }
  0x1d   :  { %v40_v13 = vrot.slane %v281_v12, 4 }
  0x1f   :  { %v41_v14 = vadd.f32 %v281_v12, %v40_v13 }
  0x21   :  { %v42_v20 = vrot.slane %v41_v14, 2 }
  0x23   :  { %v43_v21 = vadd.f32 %v42_v20, %v41_v14 }
  0x25   :  { %v44_v22 = vrot.slane %v43_v21, 1 }
  0x27   :  { %v45_v23 = vadd.f32 %v44_v22, %v43_v21 }
  0x29   :  { %282 = vlog2.f32 %v45_v23 }
  0x2f   :  { %v283_v24 = vpop.eup %282 }
  0x30   :  { %v47_v25 = vmul.f32 0.6931472, %v283_v24 }
  0x32   :  { %v48_v26 = vsub.f32 %v37_v7, %v47_v25 }
  0x34   :  { %v49_v27 = vmul.f32 10.0, %v48_v26 }
  0x36   :  { %v50_v28 = vmul.f32 1.442695, %v49_v27 }
  0x38   :  { %284 = vpow2.f32 %v50_v28 }
  0x3e   :  { %v285_v29 = vpop.eup %284 }
  0x3f   :  { %v54_v30 = vsel %vm29_vm0, 1.0, %v285_v29 }
  0x40   :  { %55 = vst [vmem:[#allocation8] sm:$0xff] %v54_v30 }
  0x41 LB: > { %s72_s12 = sld [smem:[#allocation4]]  ;;  %s378_s0 = sphi %s417_s0, %s71_s0  }
  0x47   : > { %p73_p0 = scmp.gt.f32.partialorder %s72_s12, 1e-12 }
  0x48   : > { %v77_v31 = vld [vmem:[#allocation3] sm:$0xff] (%p73_p0)  ;;  %v383_v32 = vmov (%p73_p0), 0   ;;  %v422_v33 = vld [vmem:[#allocation8] sm:$0xff] (%p73_p0) }
  0x49   : > { %76 = sbr.rel (!%p73_p0) target bundleno = 1137 (0x471), region = 20  ;;  %286 = vset.pattern.permute.xlu0 (%p73_p0), %v383_v32 }
  0x4a   : > { %81 = vperm.xlu0 (%p73_p0), %286, %v77_v31  }
  0xbc   : > { %v82_v34 = vpop.permute.xlu0 %81 }
  0xbd   : > { %v84_v35 = vmul.f32 %v82_v34, %v422_v33 }
  0xbf   : > { %v85_v36 = vrot.slane %v84_v35, 4 }
  0xc1   : > { %v86_v37 = vadd.f32 %v85_v36, %v84_v35 }
  0xc3   : > { %v87_v38 = vrot.slane %v86_v37, 2 }
  0xc5   : > { %v88_v39 = vadd.f32 %v87_v38, %v86_v37 }
  0xc7   : > { %v89_v40 = vrot.slane %v88_v39, 1 }
  0xc9   : > { %v90_v41 = vadd.f32 %v89_v40, %v88_v39 }
  0xcb   : > { %v91_v42 = vmax.f32 %v90_v41, 1e-30 }
  0xcd   : > { %287 = vrcp.f32 %v91_v42 }
  0xd3   : > { %v288_v43 = vpop.eup %287 }
  0xd4   : > { %v93_v44 = vmul.f32 %v288_v43, %v91_v42 }
  0xd6   : > { %v94_v45 = vsub.f32 2.0, %v93_v44 }
  0xd8   : > { %v95_v46 = vmul.f32 %v288_v43, %v94_v45 }
  0xda   : > { %v96_v47 = vmul.f32 %v95_v46, %v408_v18 }
  0xdc   : > { %v97_v48 = vmul.f32 %v96_v47, %v422_v33 }
  0xde   : > { %98 = vadd.xlane.f32.xlu0 %v97_v48 }
 0x151   : > { %v99_v49 = vpop.xlane.xlu0 %98 }
 0x152   : > { %v100_v50 = vmax.f32 %v99_v49, 1e-30 }
 0x154   : > { %v101_v51 = vsel %vm27_vm2, %v100_v50, 1.0 }
 0x155   : > { %289 = vrcp.f32 %v101_v51 }
 0x15b   : > { %v290_v52 = vpop.eup %289 }
 0x15c   : > { %v103_v53 = vmul.f32 %v290_v52, %v101_v51 }
 0x15e   : > { %v104_v54 = vsub.f32 2.0, %v103_v53 }
 0x160   : > { %v105_v55 = vmul.f32 %v290_v52, %v104_v54 }
 0x162   : > { %v106_v56 = vmul.f32 %v105_v55, %v412_v19 }
 0x164   : > { %v107_v57 = vmax.f32 %v106_v56, 1e-30  ;;  %vm113_vm5 = vcmp.gt.f32.partialorder %v106_v56, 0.0 }
 0x166   : > { %291 = vlog2.f32 %v107_v57 }
 0x16c   : > { %v292_v58 = vpop.eup %291 }
 0x16d   : > { %v109_v59 = vmul.f32 0.6931472, %v292_v58 }
 0x16f   : > { %v110_v60 = vmul.f32 0.90909094, %v109_v59 }
 0x171   : > { %v111_v61 = vmul.f32 1.442695, %v110_v60 }
 0x173   : > { %293 = vpow2.f32 %v111_v61 }
 0x179   : > { %v294_v62 = vpop.eup %293 }
 0x17a   : > { %v114_v63 = vsel %vm113_vm5, %v294_v62, 0.0 }
 0x17b   : > { %v115_v0 = vsel %vm28_vm1, %v114_v63, %v106_v56 }
 0x17c   : > { %v116_v1 = vmul.f32 %v115_v0, %v422_v33 }
 0x17e   : > { %v117_v2 = vrot.slane %v116_v1, 4 }
 0x180   : > { %v118_v3 = vadd.f32 %v117_v2, %v116_v1 }
 0x182   : > { %v119_v4 = vrot.slane %v118_v3, 2 }
 0x184   : > { %v120_v5 = vadd.f32 %v119_v4, %v118_v3 }
 0x186   : > { %v121_v6 = vrot.slane %v120_v5, 1 }
 0x188   : > { %v122_v7 = vadd.f32 %v121_v6, %v120_v5 }
 0x18a   : > { %v123_v8 = vmax.f32 %v122_v7, 1e-30 }
 0x18c   : > { %295 = vrcp.f32 %v123_v8 }
 0x192   : > { %v296_v9 = vpop.eup %295 }
 0x193   : > { %v125_v11 = vmul.f32 %v296_v9, %v123_v8 }
 0x195   : > { %v126_v12 = vsub.f32 2.0, %v125_v11 }
 0x197   : > { %v127_v13 = vmul.f32 %v296_v9, %v126_v12 }
 0x199   : > { %v128_v14 = vmul.f32 %v127_v13, %v408_v18 }
 0x19b   : > { %v129_v15 = vmul.f32 %v128_v14, %v422_v33 }
 0x19d   : > { %130 = vadd.xlane.f32.xlu1 %v129_v15 }
 0x210   : > { %v131_v16 = vpop.xlane.xlu1 %130 }
 0x211   : > { %v132_v17 = vmax.f32 %v131_v16, 1e-30 }
 0x213   : > { %v133_v20 = vsel %vm27_vm2, %v132_v17, 1.0 }
 0x214   : > { %297 = vrcp.f32 %v133_v20 }
 0x21a   : > { %v298_v21 = vpop.eup %297 }
 0x21b   : > { %v135_v22 = vmul.f32 %v298_v21, %v133_v20 }
 0x21d   : > { %v136_v23 = vsub.f32 2.0, %v135_v22 }
 0x21f   : > { %v137_v24 = vmul.f32 %v298_v21, %v136_v23 }
 0x221   : > { %v138_v25 = vmul.f32 %v137_v24, %v412_v19 }
 0x223   : > { %v139_v26 = vmax.f32 %v138_v25, 1e-30  ;;  %vm145_vm6 = vcmp.gt.f32.partialorder %v138_v25, 0.0 }
 0x225   : > { %299 = vlog2.f32 %v139_v26 }
 0x22b   : > { %v300_v27 = vpop.eup %299 }
 0x22c   : > { %v141_v28 = vmul.f32 0.6931472, %v300_v27 }
 0x22e   : > { %v142_v29 = vmul.f32 0.90909094, %v141_v28 }
 0x230   : > { %v143_v30 = vmul.f32 1.442695, %v142_v29 }
 0x232   : > { %301 = vpow2.f32 %v143_v30 }
 0x238   : > { %v302_v31 = vpop.eup %301 }
 0x239   : > { %v146_v32 = vsel %vm145_vm6, %v302_v31, 0.0 }
 0x23a   : > { %v147_v34 = vsel %vm28_vm1, %v146_v32, %v138_v25 }
 0x23b   : > { %v148_v35 = vmul.f32 %v147_v34, %v422_v33 }
 0x23d   : > { %v149_v36 = vrot.slane %v148_v35, 4 }
 0x23f   : > { %v150_v37 = vadd.f32 %v149_v36, %v148_v35 }
 0x241   : > { %v151_v38 = vrot.slane %v150_v37, 2 }
 0x243   : > { %v152_v39 = vadd.f32 %v151_v38, %v150_v37 }
 0x245   : > { %v153_v40 = vrot.slane %v152_v39, 1 }
 0x247   : > { %v154_v41 = vadd.f32 %v153_v40, %v152_v39 }
 0x249   : > { %v155_v42 = vmax.f32 %v154_v41, 1e-30 }
 0x24b   : > { %303 = vrcp.f32 %v155_v42 }
 0x251   : > { %v304_v43 = vpop.eup %303 }
 0x252   : > { %v157_v44 = vmul.f32 %v304_v43, %v155_v42 }
 0x254   : > { %v158_v45 = vsub.f32 2.0, %v157_v44 }
 0x256   : > { %v159_v46 = vmul.f32 %v304_v43, %v158_v45 }
 0x258   : > { %v160_v47 = vmul.f32 %v159_v46, %v408_v18 }
 0x25a   : > { %v161_v48 = vmul.f32 %v160_v47, %v422_v33 }
 0x25c   : > { %162 = vadd.xlane.f32.xlu1 %v161_v48 }
 0x2cf   : > { %v163_v49 = vpop.xlane.xlu1 %162 }
 0x2d0   : > { %v164_v50 = vmax.f32 %v163_v49, 1e-30 }
 0x2d2   : > { %v165_v51 = vsel %vm27_vm2, %v164_v50, 1.0 }
 0x2d3   : > { %305 = vrcp.f32 %v165_v51 }
 0x2d9   : > { %v306_v52 = vpop.eup %305 }
 0x2da   : > { %v167_v53 = vmul.f32 %v306_v52, %v165_v51 }
 0x2dc   : > { %v168_v54 = vsub.f32 2.0, %v167_v53 }
 0x2de   : > { %v169_v55 = vmul.f32 %v306_v52, %v168_v54 }
 0x2e0   : > { %v170_v56 = vmul.f32 %v169_v55, %v412_v19 }
 0x2e2   : > { %v171_v57 = vmax.f32 %v170_v56, 1e-30  ;;  %vm177_vm7 = vcmp.gt.f32.partialorder %v170_v56, 0.0 }
 0x2e4   : > { %307 = vlog2.f32 %v171_v57 }
 0x2ea   : > { %v308_v58 = vpop.eup %307 }
 0x2eb   : > { %v173_v59 = vmul.f32 0.6931472, %v308_v58 }
 0x2ed   : > { %v174_v60 = vmul.f32 0.90909094, %v173_v59 }
 0x2ef   : > { %v175_v61 = vmul.f32 1.442695, %v174_v60 }
 0x2f1   : > { %309 = vpow2.f32 %v175_v61 }
 0x2f7   : > { %v310_v62 = vpop.eup %309 }
 0x2f8   : > { %v178_v63 = vsel %vm177_vm7, %v310_v62, 0.0 }
 0x2f9   : > { %v179_v0 = vsel %vm28_vm1, %v178_v63, %v170_v56 }
 0x2fa   : > { %v180_v1 = vmul.f32 %v179_v0, %v422_v33 }
 0x2fc   : > { %v181_v2 = vrot.slane %v180_v1, 4 }
 0x2fe   : > { %v182_v3 = vadd.f32 %v181_v2, %v180_v1 }
 0x300   : > { %v183_v4 = vrot.slane %v182_v3, 2 }
 0x302   : > { %v184_v5 = vadd.f32 %v183_v4, %v182_v3 }
 0x304   : > { %v185_v6 = vrot.slane %v184_v5, 1 }
 0x306   : > { %v186_v7 = vadd.f32 %v185_v6, %v184_v5 }
 0x308   : > { %v187_v8 = vmax.f32 %v186_v7, 1e-30 }
 0x30a   : > { %311 = vrcp.f32 %v187_v8 }
 0x310   : > { %v312_v9 = vpop.eup %311 }
 0x311   : > { %v189_v11 = vmul.f32 %v312_v9, %v187_v8 }
 0x313   : > { %v190_v12 = vsub.f32 2.0, %v189_v11 }
 0x315   : > { %v191_v13 = vmul.f32 %v312_v9, %v190_v12 }
 0x317   : > { %v192_v14 = vmul.f32 %v191_v13, %v408_v18 }
 0x319   : > { %v193_v15 = vmul.f32 %v192_v14, %v422_v33  ;;  %225 = vst [vmem:[#allocation2] sm:$0x1] %v192_v14 }
 0x31b   : > { %194 = vadd.xlane.f32.xlu2 %v193_v15 }
 0x38e   : > { %v195_v16 = vpop.xlane.xlu2 %194 }
 0x38f   : > { %v196_v17 = vmax.f32 %v195_v16, 1e-30 }
 0x391   : > { %v197_v20 = vsel %vm27_vm2, %v196_v17, 1.0 }
 0x392   : > { %313 = vrcp.f32 %v197_v20 }
 0x398   : > { %v314_v21 = vpop.eup %313 }
 0x399   : > { %v199_v22 = vmul.f32 %v314_v21, %v197_v20 }
 0x39b   : > { %v200_v23 = vsub.f32 2.0, %v199_v22 }
 0x39d   : > { %v201_v24 = vmul.f32 %v314_v21, %v200_v23 }
 0x39f   : > { %v202_v25 = vmul.f32 %v201_v24, %v412_v19 }
 0x3a1   : > { %v203_v26 = vmax.f32 %v202_v25, 1e-30  ;;  %vm209_vm8 = vcmp.gt.f32.partialorder %v202_v25, 0.0 }
 0x3a3   : > { %315 = vlog2.f32 %v203_v26 }
 0x3a9   : > { %v316_v27 = vpop.eup %315 }
 0x3aa   : > { %v205_v28 = vmul.f32 0.6931472, %v316_v27 }
 0x3ac   : > { %v206_v29 = vmul.f32 0.90909094, %v205_v28 }
 0x3ae   : > { %v207_v33 = vmul.f32 1.442695, %v206_v29 }
 0x3b0   : > { %317 = vpow2.f32 %v207_v33 }
 0x3b6   : > { %v318_v30 = vpop.eup %317 }
 0x3b7   : > { %v210_v31 = vsel %vm209_vm8, %v318_v30, 0.0 }
 0x3b8   : > { %v211_v32 = vsel %vm28_vm1, %v210_v31, %v202_v25 }
 0x3b9   : > { %v212_v34 = vsub.f32 %v211_v32, %v179_v0  ;;  %226 = vst.msk [vmem:[#allocation3] sm:$0xff] %vm62_vm4, %v211_v32 }
 0x3bb   : > { %v213_v35 = vmul.f32 %v212_v34, %v212_v34 }
 0x3bd   : > { %v214_v36 = vsel %vm62_vm4, %v213_v35, 0.0 }
 0x3be   : > { %215 = vadd.xlane.f32.xlu2 %v214_v36 }
 0x431   : > { %v216_v37 = vpop.xlane.xlu2 %215 }
 0x432   : > { %v217_v38 = vrot.slane %v216_v37, 4 }
 0x434   : > { %v218_v39 = vadd.f32 %v217_v38, %v216_v37 }
 0x436   : > { %v219_v40 = vrot.slane %v218_v39, 2 }
 0x438   : > { %v220_v41 = vadd.f32 %v219_v40, %v218_v39 }
 0x43a   : > { %v221_v42 = vrot.slane %v220_v41, 1 }
 0x43c   : > { %v222_v43 = vadd.f32 %v221_v42, %v220_v41 }
 0x43e   : > { %264 = vpush %v222_v43 }
 0x46f   : > { %s265_s13 = spop %264 }
 0x470   : > { %224 = sst [smem:[#allocation4]] %s265_s13 }
 0x471 PF: > { %s71_s0 = sadd.s32 1, %s378_s0  }
 0x472   : > { %p68_p1 = scmp.ge.s32.totalorder %s71_s0, 250  }
 0x473   :  { %v234_v44 = vld [vmem:[#allocation3] sm:$0xff] (%p68_p1)  ;;  %v384_v45 = vmov (%p68_p1), 0   ;;  %v227_v46 = vld [vmem:[#allocation2] sm:$0x1] (%p68_p1)  ;;  %v229_v49 = vld [vmem:[#allocation8] sm:$0xff] (%p68_p1)  ;;  %s385_s14 = smov (%p68_p1), [#allocation8]  }
 0x474   :  { %70 = sbr.rel (!%p68_p1) target bundleno = 65 (0x41), region = 40  ;;  %319 = vset.pattern.permute.xlu0 (%p68_p1), %v384_v45  ;;  %v228_v47 = vmul.f32 (%p68_p1), 8.0, %v227_v46  ;;  %s247_s15 = sshll.u32 (%p68_p1), %s385_s14, 4  ;;  %s248_s15 = int_to_ptr.vmem [resolvable:$true] %s247_s15 }
 0x475   :  { %237 = vperm.xlu0 (%p68_p1), %319, %v234_v44   ;;  %s249_s18 = sshll.u32 (%p68_p1), %s465_s1, 4  ;;  %s250_s18 = int_to_ptr.hbm [resolvable:$true] %s249_s18 }
 0x476   :  { %v231_v48 = vperm.slane (%p68_p1), %v228_v47, 0 }
 0x478   :  { %v233_v50 = vmul.f32 (%p68_p1), %v231_v48, %v229_v49 }
 0x4e7   :  { %v238_v51 = vpop.permute.xlu0 %237 }
 0x4e8   :  { %v240_v52 = vmul.f32 %v238_v51, %v233_v50 }
 0x4ea   :  { %241 = vst [vmem:[#allocation8] sm:$0xff] %v240_v52 }
 0x4eb   :  { %252 = dma.vmem_to_hbm [thread:$0]  %s248_s15, 128, %s250_s18, [#allocation7]  }
 0x4ec   :  { %374 = dma.done.wait [#allocation7], 128  }
 0x4ed   :  { %375 = vsyncadd [#allocation7], 4294967168 }
 0x4ee   :  { %257 = vsyncpa [#allocation6], 1 }
 0x4ef   :  { %258 = vsyncpa [#allocation7], 1 }

</bundles_post_ra>
